<compile_context>
chip_gen: v5e
topology: v5e:2x2
jax: 0.10.0
libtpu: 0.0.40
codegen_flags: <defaults>
</compile_context>

<pallas_src>
import jax
import jax.numpy as jnp
from jax import lax
from jax.experimental import pallas as pl
from jax.experimental.pallas import tpu as pltpu


def _rnn2_kernel(x_ref,        # (sl, tb, D)   time-major batch tile
                 wih12_ref,    # (D, 2H)       [Wih1^T | Wih2x^T]
                 b12_ref,      # (1, 2H)       [b1 | b2]
                 whh_bd_ref,   # (2H, 2H)      blockdiag(Whh1^T, Whh2^T)
                 wfc1_ref,     # (1, H)        fc1 weight row (in-loop reduce)
                 wih2s_ref,    # (1, H)        sr column of Wih2^T
                 wfc1p_ref,    # (1, 2H)       [wfc1 | 0]   (epilogue head)
                 wfc2p_ref,    # (1, 2H)       [0 | wfc2]   (epilogue head)
                 bfc_ref,      # SMEM (2,)     [bfc1, bfc2]
                 out_ref, sr_ref,              # (sl, tb) each
                 h12_ref):     # (sl, tb, 2H)  scratch: xw, overwritten with [h1|h2]
    sl, tb, D = x_ref.shape
    H2 = whh_bd_ref.shape[0]
    H = H2 // 2
    f32 = jnp.float32

    whh_bd = whh_bd_ref[...]
    bfc1 = bfc_ref[0]
    bfc2 = bfc_ref[1]
    # Hoisted broadcasts (JAX does not CSE broadcast_in_dim inside loops).
    wfc1_b = jnp.broadcast_to(wfc1_ref[...], (tb, H))
    wih2s_b = jnp.broadcast_to(wih2s_ref[...], (tb, H))

    # ---- Fused time-parallel input projection: ONE MXU matmul. -------------
    x2d = x_ref[...].reshape(sl * tb, D)
    h12_ref[...] = (jnp.dot(x2d, wih12_ref[...], preferred_element_type=f32)
                    + b12_ref[...]).reshape(sl, tb, H2)

    # ---- Serial recurrence: ONE fused h @ blockdiag(Whh1, Whh2) per step. --
    def step(t, h12):
        hw = jnp.dot(h12, whh_bd, preferred_element_type=f32)    # (tb, 2H)
        pre = h12_ref[t] + hw                                     # xw_t + h@Whh
        h1 = jnp.tanh(pre[:, :H])
        # fc1 head needed in-loop to feed RNN2: VPU/XLU reduce, not an N=1 MXU
        # matmul.  (Replicated-column matmul alternative only if XLU-paced.)
        sr_t = jnp.maximum(
            jnp.sum(h1 * wfc1_b, axis=-1, keepdims=True) + bfc1, 0.0)  # (tb,1)
        h2 = jnp.tanh(pre[:, H:] + sr_t * wih2s_b)
        h12_new = jnp.concatenate([h1, h2], axis=-1)              # next carry
        h12_ref[t] = h12_new       # overwrite the consumed xw slot in place
        return h12_new

    h12_0 = jnp.zeros((tb, H2), f32)
    # Capped unroll: keeps LLO cross-step overlap without blowing up compile
    # time / instruction memory for long sequences.
    lax.fori_loop(0, sl, step, h12_0, unroll=min(sl, 8))

    # ---- Deferred heads: one lane-dense (sl, tb) write per output. ---------
    h_all = h12_ref[...]                                     # (sl, tb, 2H)
    wfc1p = wfc1p_ref[...].reshape(1, 1, H2)
    wfc2p = wfc2p_ref[...].reshape(1, 1, H2)
    sr_ref[...] = jnp.maximum(jnp.sum(h_all * wfc1p, axis=-1) + bfc1, 0.0)
    out_ref[...] = jnp.maximum(jnp.sum(h_all * wfc2p, axis=-1) + bfc2, 0.0)


def _round_up(n, m):
    return ((n + m - 1) // m) * m


def _num_tensorcores():
    """Best-effort TensorCore count of the local device (2 on v7x)."""
    try:
        return max(1, int(getattr(jax.devices()[0], "num_cores", 1)))
    except Exception:
        return 1


def _vmem_need_bytes(sl, tb, D, H):
    # Persistent h12 scratch + double-buffered x block + two double-buffered
    # (sl, tb) output blocks, all f32.
    return 4 * (sl * tb * 2 * H + 2 * sl * tb * D + 2 * 2 * sl * tb)


def _pick_batch_tiling(bs, sl, D, H, n_cores, budget_bytes):
    """Pad-aware, VMEM-budget-aware batch tile -> (tb, BS, n_tiles).

    A single tile may be any x8 width (block dims == full array dims); a
    multi-tile split requires lane-aligned (x128) tb so the (sl, BS) output
    blocks stay legal.
    """
    tb_single = _round_up(bs, 8)
    core_split = n_cores >= 2 and bs >= 256          # feed both TCs on v7x
    vmem_split = (_vmem_need_bytes(sl, tb_single, D, H) > budget_bytes
                  and tb_single > 128)
    if not (core_split or vmem_split):
        # TODO(synk): if the budget is still exceeded here (huge sl*H with a
        # tiny batch), chunk the time axis instead of the batch.
        return tb_single, tb_single, 1
    n_tiles = n_cores if core_split else 2
    while True:
        tb = _round_up((bs + n_tiles - 1) // n_tiles, 128)
        if _vmem_need_bytes(sl, tb, D, H) <= budget_bytes or tb == 128:
            return tb, n_tiles * tb, n_tiles
        n_tiles += 1


@jax.jit
def rnn2_forward(x, params):
    """x: (bs, sl, input_dim) float32 -> (out (bs,sl,1), sr (bs,sl,1))."""
    bs, sl, D = x.shape
    H = params['whh1'].shape[0]
    f32 = jnp.float32

    # ---- Tiny host-side (traced) weight fusion for the kernel. -------------
    wih12 = jnp.concatenate([params['wih1'], params['wih2x']], axis=1)   # (D,2H)
    b12 = jnp.concatenate([params['b1'], params['b2']], axis=1)          # (1,2H)
    whh_bd = jnp.zeros((2 * H, 2 * H), f32)
    whh_bd = whh_bd.at[:H, :H].set(params['whh1']).at[H:, H:].set(params['whh2'])
    zH = jnp.zeros((1, H), f32)
    wfc1p = jnp.concatenate([params['wfc1'], zH], axis=1)                # (1,2H)
    wfc2p = jnp.concatenate([zH, params['wfc2']], axis=1)                # (1,2H)
    bfc = jnp.concatenate([params['bfc1'][0], params['bfc2'][0]])        # (2,)

    # ---- Pad-aware batch tiling ("parallel" grid -> megacore / 2nd TC). ----
    budget = 40 << 20
    tb, BS, n_tiles = _pick_batch_tiling(bs, sl, D, H, _num_tensorcores(), budget)
    x_tm = jnp.transpose(x, (1, 0, 2))                   # (sl, bs, D) time-major
    if BS != bs:
        x_tm = jnp.pad(x_tm, ((0, 0), (0, BS - bs), (0, 0)))

    def full(a):
        return pl.BlockSpec(a.shape, lambda i, _nd=a.ndim: (0,) * _nd)

    need = _vmem_need_bytes(sl, tb, D, H)
    vmem_limit = int(min(48 << 20, max(32 << 20, need + (8 << 20))))

    out_tm, sr_tm = pl.pallas_call(
        _rnn2_kernel,
        out_shape=(jax.ShapeDtypeStruct((sl, BS), f32),
                   jax.ShapeDtypeStruct((sl, BS), f32)),
        grid=(n_tiles,),
        in_specs=[
            pl.BlockSpec((sl, tb, D), lambda i: (0, i, 0)),
            full(wih12), full(b12), full(whh_bd),
            full(params['wfc1']), full(params['wih2s']),
            full(wfc1p), full(wfc2p),
            pl.BlockSpec(memory_space=pltpu.MemorySpace.SMEM),
        ],
        out_specs=(pl.BlockSpec((sl, tb), lambda i: (0, i)),
                   pl.BlockSpec((sl, tb), lambda i: (0, i))),
        scratch_shapes=[pltpu.VMEM((sl, tb, 2 * H), f32)],
        compiler_params=pltpu.CompilerParams(
            dimension_semantics=("parallel",),
            vmem_limit_bytes=vmem_limit),
    )(x_tm, wih12, b12, whh_bd,
      params['wfc1'], params['wih2s'], wfc1p, wfc2p, bfc)

    out = jnp.transpose(out_tm[:, :bs])[..., None]        # (bs, sl, 1)
    sr = jnp.transpose(sr_tm[:, :bs])[..., None]          # (bs, sl, 1)
    return out, sr


def make_params(key, input_dim, hidden_dim, output_dim=1):
    """Deterministic params mirroring nn.RNN / nn.Linear shapes (pre-transposed)."""
    assert output_dim == 1, "forward's sr.view(bs, sl, 1) implies output_dim == 1"
    ks = jax.random.split(key, 12)
    s = 1.0 / jnp.sqrt(hidden_dim)

    def u(k, shape):
        return jax.random.uniform(k, shape, jnp.float32, -s, s)

    # rnn1: weight_ih (H, D), weight_hh (H, H), bias_ih (H,), bias_hh (H,)
    w_ih1 = u(ks[0], (hidden_dim, input_dim))
    w_hh1 = u(ks[1], (hidden_dim, hidden_dim))
    b_ih1 = u(ks[2], (hidden_dim,))
    b_hh1 = u(ks[3], (hidden_dim,))
    # rnn2: input size D+1
    w_ih2 = u(ks[4], (hidden_dim, input_dim + 1))
    w_hh2 = u(ks[5], (hidden_dim, hidden_dim))
    b_ih2 = u(ks[6], (hidden_dim,))
    b_hh2 = u(ks[7], (hidden_dim,))
    # fc1, fc2: (output_dim, hidden_dim)
    w_fc1 = u(ks[8], (output_dim, hidden_dim))
    b_fc1 = u(ks[9], (output_dim,))
    w_fc2 = u(ks[10], (output_dim, hidden_dim))
    b_fc2 = u(ks[11], (output_dim,))

    wih2_t = w_ih2.T  # (D+1, H)
    return {
        'wih1': w_ih1.T,                         # (D, H)
        'whh1': w_hh1.T,                         # (H, H)
        'b1': (b_ih1 + b_hh1)[None, :],          # (1, H)
        'wfc1': w_fc1,                           # (1, H)  row layout for VPU reduce
        'bfc1': b_fc1[None, :],                  # (1, 1)
        'wih2x': wih2_t[:input_dim],             # (D, H)
        'wih2s': wih2_t[input_dim:],             # (1, H)
        'whh2': w_hh2.T,                         # (H, H)
        'b2': (b_ih2 + b_hh2)[None, :],          # (1, H)
        'wfc2': w_fc2,                           # (1, H)
        'bfc2': b_fc2[None, :],                  # (1, 1)
    }


def rnn2_reference(x, p):
    """Pure-JAX reference of the PyTorch forward (for a sanity check)."""
    bs, sl, _ = x.shape

    def run_rnn(xin, wih, whh, b):
        def step(h, xt):
            h = jnp.tanh(xt @ wih + h @ whh + b)
            return h, h
        h0 = jnp.zeros((bs, wih.shape[1]), x.dtype)
        _, o = lax.scan(step, h0, jnp.transpose(xin, (1, 0, 2)))
        return jnp.transpose(o, (1, 0, 2))

    o1 = run_rnn(x, p['wih1'], p['whh1'], p['b1'][0])
    sr = jax.nn.relu(o1 @ p['wfc1'].T + p['bfc1'][0])
    x2 = jnp.concatenate([x, sr], axis=2)
    wih2 = jnp.concatenate([p['wih2x'], p['wih2s']], axis=0)
    o2 = run_rnn(x2, wih2, p['whh2'], p['b2'][0])
    out = jax.nn.relu(o2 @ p['wfc2'].T + p['bfc2'][0])
    return out, sr


if __name__ == "__main__":
    bs, sl, input_dim, hidden_dim, output_dim = 2, 8, 4, 32, 1

    key = jax.random.PRNGKey(0)
    kx, kp = jax.random.split(key)
    x = jax.random.normal(kx, (bs, sl, input_dim), jnp.float32)
    params = make_params(kp, input_dim, hidden_dim, output_dim)

    out, sr = rnn2_forward(x, params)
    out, sr = jax.block_until_ready(out), jax.block_until_ready(sr)

    out_ref, sr_ref = rnn2_reference(x, params)
    assert out.shape == (bs, sl, output_dim) and sr.shape == (bs, sl, output_dim)
    assert jnp.allclose(out, out_ref, atol=1e-4, rtol=1e-4)
    assert jnp.allclose(sr, sr_ref, atol=1e-4, rtol=1e-4)

    print("KERNEL_OK")
</pallas_src>

<mosaic_0001>
module attributes {stable_mosaic.version = 11 : i64} {
  func.func @_rnn2_kernel(%arg0: i32, %arg1: memref<8x8x4xf32, #tpu.memory_space<vmem>>, %arg2: memref<4x64xf32, #tpu.memory_space<vmem>>, %arg3: memref<1x64xf32, #tpu.memory_space<vmem>>, %arg4: memref<64x64xf32, #tpu.memory_space<vmem>>, %arg5: memref<1x32xf32, #tpu.memory_space<vmem>>, %arg6: memref<1x32xf32, #tpu.memory_space<vmem>>, %arg7: memref<1x64xf32, #tpu.memory_space<vmem>>, %arg8: memref<1x64xf32, #tpu.memory_space<vmem>>, %arg9: memref<2xf32, #tpu.memory_space<smem>>, %arg10: memref<8x8xf32, #tpu.memory_space<vmem>>, %arg11: memref<8x8xf32, #tpu.memory_space<vmem>>, %arg12: memref<8x8x64xf32, #tpu.memory_space<vmem>>) attributes {dimension_semantics = [#tpu.dimension_semantics<parallel>], iteration_bounds = array<i64: 1>, scalar_prefetch = 0 : i64, scratch_operands = 1 : i64, tpu.core_type = #tpu.core_type<tc>, window_params = [{transform_indices = @transform_0, window_bounds = array<i64: 8, 8, 4>}, {pipeline_mode = #tpu.pipeline_mode<synchronous>, transform_indices = @transform_1, window_bounds = array<i64: 4, 64>}, {pipeline_mode = #tpu.pipeline_mode<synchronous>, transform_indices = @transform_2, window_bounds = array<i64: 1, 64>}, {pipeline_mode = #tpu.pipeline_mode<synchronous>, transform_indices = @transform_3, window_bounds = array<i64: 64, 64>}, {pipeline_mode = #tpu.pipeline_mode<synchronous>, transform_indices = @transform_4, window_bounds = array<i64: 1, 32>}, {pipeline_mode = #tpu.pipeline_mode<synchronous>, transform_indices = @transform_5, window_bounds = array<i64: 1, 32>}, {pipeline_mode = #tpu.pipeline_mode<synchronous>, transform_indices = @transform_6, window_bounds = array<i64: 1, 64>}, {pipeline_mode = #tpu.pipeline_mode<synchronous>, transform_indices = @transform_7, window_bounds = array<i64: 1, 64>}, {transform_indices = @transform_8, window_bounds = array<i64: 2>}, {transform_indices = @transform_9, window_bounds = array<i64: 8, 8>}, {transform_indices = @transform_10, window_bounds = array<i64: 8, 8>}]} {
    %c0 = arith.constant 0 : index
    %c0_0 = arith.constant 0 : index
    %0 = vector.load %arg4[%c0, %c0_0] : memref<64x64xf32, #tpu.memory_space<vmem>>, vector<64x64xf32>
    %c0_1 = arith.constant 0 : index
    %1 = memref.load %arg9[%c0_1] : memref<2xf32, #tpu.memory_space<smem>>
    %c1 = arith.constant 1 : index
    %2 = memref.load %arg9[%c1] : memref<2xf32, #tpu.memory_space<smem>>
    %c0_2 = arith.constant 0 : index
    %c0_3 = arith.constant 0 : index
    %3 = vector.load %arg5[%c0_2, %c0_3] : memref<1x32xf32, #tpu.memory_space<vmem>>, vector<1x32xf32>
    %4 = vector.shape_cast %3 : vector<1x32xf32> to vector<1x32xf32>
    %5 = vector.broadcast %4 : vector<1x32xf32> to vector<8x32xf32>
    %c0_4 = arith.constant 0 : index
    %c0_5 = arith.constant 0 : index
    %6 = vector.load %arg6[%c0_4, %c0_5] : memref<1x32xf32, #tpu.memory_space<vmem>>, vector<1x32xf32>
    %7 = vector.shape_cast %6 : vector<1x32xf32> to vector<1x32xf32>
    %8 = vector.broadcast %7 : vector<1x32xf32> to vector<8x32xf32>
    %c0_6 = arith.constant 0 : index
    %c0_7 = arith.constant 0 : index
    %c0_8 = arith.constant 0 : index
    %9 = vector.load %arg1[%c0_6, %c0_7, %c0_8] : memref<8x8x4xf32, #tpu.memory_space<vmem>>, vector<8x8x4xf32>
    %10 = vector.shape_cast %9 : vector<8x8x4xf32> to vector<64x4xf32>
    %c0_9 = arith.constant 0 : index
    %c0_10 = arith.constant 0 : index
    %11 = vector.load %arg2[%c0_9, %c0_10] : memref<4x64xf32, #tpu.memory_space<vmem>>, vector<4x64xf32>
    %cst = arith.constant dense<0.000000e+00> : vector<64x64xf32>
    %12 = tpu.matmul %10, %11, %cst {dimension_numbers = #tpu.dot_dimension_numbers<[1], [0], [0], [1], [0, 0, 1, 1], [], []>} : vector<64x4xf32>, vector<4x64xf32>, vector<64x64xf32> -> vector<64x64xf32>
    %c0_11 = arith.constant 0 : index
    %c0_12 = arith.constant 0 : index
    %13 = vector.load %arg3[%c0_11, %c0_12] : memref<1x64xf32, #tpu.memory_space<vmem>>, vector<1x64xf32>
    %14 = vector.broadcast %13 : vector<1x64xf32> to vector<64x64xf32>
    %15 = arith.addf %12, %14 : vector<64x64xf32>
    %16 = vector.shape_cast %15 : vector<64x64xf32> to vector<8x8x64xf32>
    %c0_13 = arith.constant 0 : index
    %c0_14 = arith.constant 0 : index
    %c0_15 = arith.constant 0 : index
    %17 = vector.load %arg12[%c0_13, %c0_14, %c0_15] : memref<8x8x64xf32, #tpu.memory_space<vmem>>, vector<8x8x64xf32>
    tpu.vector_store %arg12[%c0_13, %c0_14, %c0_15], %16 {strides = array<i32>} : memref<8x8x64xf32, #tpu.memory_space<vmem>>, vector<8x8x64xf32>,
    %cst_16 = arith.constant 0.000000e+00 : f32
    %18 = vector.broadcast %cst_16 : f32 to vector<8x64xf32>
    %c0_i32 = arith.constant 0 : i32
    %cst_17 = arith.constant dense<0.000000e+00> : vector<8x64xf32>
    %19 = tpu.matmul %18, %0, %cst_17 {dimension_numbers = #tpu.dot_dimension_numbers<[1], [0], [0], [1], [0, 0, 1, 1], [], []>} : vector<8x64xf32>, vector<64x64xf32>, vector<8x64xf32> -> vector<8x64xf32>
    %20 = arith.index_cast %c0_i32 : i32 to index
    %c0_18 = arith.constant 0 : index
    %c0_19 = arith.constant 0 : index
    %21 = vector.load %arg12[%20, %c0_18, %c0_19] : memref<8x8x64xf32, #tpu.memory_space<vmem>>, vector<1x8x64xf32>
    %22 = vector.shape_cast %21 : vector<1x8x64xf32> to vector<8x64xf32>
    %23 = arith.addf %22, %19 : vector<8x64xf32>
    %24 = vector.extract_strided_slice %23 {offsets = [0, 0], sizes = [8, 32], strides = [1, 1]} : vector<8x64xf32> to vector<8x32xf32>
    %25 = math.tanh %24 : vector<8x32xf32>
    %26 = arith.mulf %25, %5 : vector<8x32xf32>
    %cst_20 = arith.constant dense<0.000000e+00> : vector<8xf32>
    %27 = vector.multi_reduction <add>, %26, %cst_20 [1] : vector<8x32xf32> to vector<8xf32>
    %28 = vector.shape_cast %27 : vector<8xf32> to vector<8x1xf32>
    %29 = vector.broadcast %1 : f32 to vector<8x1xf32>
    %30 = arith.addf %28, %29 : vector<8x1xf32>
    %cst_21 = arith.constant 0.000000e+00 : f32
    %31 = vector.broadcast %cst_21 : f32 to vector<8x1xf32>
    %32 = arith.maximumf %30, %31 : vector<8x1xf32>
    %33 = vector.extract_strided_slice %23 {offsets = [0, 32], sizes = [8, 32], strides = [1, 1]} : vector<8x64xf32> to vector<8x32xf32>
    %34 = vector.broadcast %32 : vector<8x1xf32> to vector<8x32xf32>
    %35 = arith.mulf %34, %8 : vector<8x32xf32>
    %36 = arith.addf %33, %35 : vector<8x32xf32>
    %37 = math.tanh %36 : vector<8x32xf32>
    %38 = tpu.concatenate %25, %37 in 1 : vector<8x32xf32>, vector<8x32xf32> -> vector<8x64xf32>
    %39 = arith.index_cast %c0_i32 : i32 to index
    %c0_22 = arith.constant 0 : index
    %c0_23 = arith.constant 0 : index
    %40 = vector.load %arg12[%39, %c0_22, %c0_23] : memref<8x8x64xf32, #tpu.memory_space<vmem>>, vector<1x8x64xf32>
    %41 = vector.shape_cast %40 : vector<1x8x64xf32> to vector<8x64xf32>
    %42 = vector.shape_cast %38 : vector<8x64xf32> to vector<1x8x64xf32>
    tpu.vector_store %arg12[%39, %c0_22, %c0_23], %42 {strides = array<i32>} : memref<8x8x64xf32, #tpu.memory_space<vmem>>, vector<1x8x64xf32>,
    %c1_i32 = arith.constant 1 : i32
    %cst_24 = arith.constant dense<0.000000e+00> : vector<8x64xf32>
    %43 = tpu.matmul %38, %0, %cst_24 {dimension_numbers = #tpu.dot_dimension_numbers<[1], [0], [0], [1], [0, 0, 1, 1], [], []>} : vector<8x64xf32>, vector<64x64xf32>, vector<8x64xf32> -> vector<8x64xf32>
    %44 = arith.index_cast %c1_i32 : i32 to index
    %c0_25 = arith.constant 0 : index
    %c0_26 = arith.constant 0 : index
    %45 = vector.load %arg12[%44, %c0_25, %c0_26] : memref<8x8x64xf32, #tpu.memory_space<vmem>>, vector<1x8x64xf32>
    %46 = vector.shape_cast %45 : vector<1x8x64xf32> to vector<8x64xf32>
    %47 = arith.addf %46, %43 : vector<8x64xf32>
    %48 = vector.extract_strided_slice %47 {offsets = [0, 0], sizes = [8, 32], strides = [1, 1]} : vector<8x64xf32> to vector<8x32xf32>
    %49 = math.tanh %48 : vector<8x32xf32>
    %50 = arith.mulf %49, %5 : vector<8x32xf32>
    %cst_27 = arith.constant dense<0.000000e+00> : vector<8xf32>
    %51 = vector.multi_reduction <add>, %50, %cst_27 [1] : vector<8x32xf32> to vector<8xf32>
    %52 = vector.shape_cast %51 : vector<8xf32> to vector<8x1xf32>
    %53 = vector.broadcast %1 : f32 to vector<8x1xf32>
    %54 = arith.addf %52, %53 : vector<8x1xf32>
    %cst_28 = arith.constant 0.000000e+00 : f32
    %55 = vector.broadcast %cst_28 : f32 to vector<8x1xf32>
    %56 = arith.maximumf %54, %55 : vector<8x1xf32>
    %57 = vector.extract_strided_slice %47 {offsets = [0, 32], sizes = [8, 32], strides = [1, 1]} : vector<8x64xf32> to vector<8x32xf32>
    %58 = vector.broadcast %56 : vector<8x1xf32> to vector<8x32xf32>
    %59 = arith.mulf %58, %8 : vector<8x32xf32>
    %60 = arith.addf %57, %59 : vector<8x32xf32>
    %61 = math.tanh %60 : vector<8x32xf32>
    %62 = tpu.concatenate %49, %61 in 1 : vector<8x32xf32>, vector<8x32xf32> -> vector<8x64xf32>
    %63 = arith.index_cast %c1_i32 : i32 to index
    %c0_29 = arith.constant 0 : index
    %c0_30 = arith.constant 0 : index
    %64 = vector.load %arg12[%63, %c0_29, %c0_30] : memref<8x8x64xf32, #tpu.memory_space<vmem>>, vector<1x8x64xf32>
    %65 = vector.shape_cast %64 : vector<1x8x64xf32> to vector<8x64xf32>
    %66 = vector.shape_cast %62 : vector<8x64xf32> to vector<1x8x64xf32>
    tpu.vector_store %arg12[%63, %c0_29, %c0_30], %66 {strides = array<i32>} : memref<8x8x64xf32, #tpu.memory_space<vmem>>, vector<1x8x64xf32>,
    %c2_i32 = arith.constant 2 : i32
    %cst_31 = arith.constant dense<0.000000e+00> : vector<8x64xf32>
    %67 = tpu.matmul %62, %0, %cst_31 {dimension_numbers = #tpu.dot_dimension_numbers<[1], [0], [0], [1], [0, 0, 1, 1], [], []>} : vector<8x64xf32>, vector<64x64xf32>, vector<8x64xf32> -> vector<8x64xf32>
    %68 = arith.index_cast %c2_i32 : i32 to index
    %c0_32 = arith.constant 0 : index
    %c0_33 = arith.constant 0 : index
    %69 = vector.load %arg12[%68, %c0_32, %c0_33] : memref<8x8x64xf32, #tpu.memory_space<vmem>>, vector<1x8x64xf32>
    %70 = vector.shape_cast %69 : vector<1x8x64xf32> to vector<8x64xf32>
    %71 = arith.addf %70, %67 : vector<8x64xf32>
    %72 = vector.extract_strided_slice %71 {offsets = [0, 0], sizes = [8, 32], strides = [1, 1]} : vector<8x64xf32> to vector<8x32xf32>
    %73 = math.tanh %72 : vector<8x32xf32>
    %74 = arith.mulf %73, %5 : vector<8x32xf32>
    %cst_34 = arith.constant dense<0.000000e+00> : vector<8xf32>
    %75 = vector.multi_reduction <add>, %74, %cst_34 [1] : vector<8x32xf32> to vector<8xf32>
    %76 = vector.shape_cast %75 : vector<8xf32> to vector<8x1xf32>
    %77 = vector.broadcast %1 : f32 to vector<8x1xf32>
    %78 = arith.addf %76, %77 : vector<8x1xf32>
    %cst_35 = arith.constant 0.000000e+00 : f32
    %79 = vector.broadcast %cst_35 : f32 to vector<8x1xf32>
    %80 = arith.maximumf %78, %79 : vector<8x1xf32>
    %81 = vector.extract_strided_slice %71 {offsets = [0, 32], sizes = [8, 32], strides = [1, 1]} : vector<8x64xf32> to vector<8x32xf32>
    %82 = vector.broadcast %80 : vector<8x1xf32> to vector<8x32xf32>
    %83 = arith.mulf %82, %8 : vector<8x32xf32>
    %84 = arith.addf %81, %83 : vector<8x32xf32>
    %85 = math.tanh %84 : vector<8x32xf32>
    %86 = tpu.concatenate %73, %85 in 1 : vector<8x32xf32>, vector<8x32xf32> -> vector<8x64xf32>
    %87 = arith.index_cast %c2_i32 : i32 to index
    %c0_36 = arith.constant 0 : index
    %c0_37 = arith.constant 0 : index
    %88 = vector.load %arg12[%87, %c0_36, %c0_37] : memref<8x8x64xf32, #tpu.memory_space<vmem>>, vector<1x8x64xf32>
    %89 = vector.shape_cast %88 : vector<1x8x64xf32> to vector<8x64xf32>
    %90 = vector.shape_cast %86 : vector<8x64xf32> to vector<1x8x64xf32>
    tpu.vector_store %arg12[%87, %c0_36, %c0_37], %90 {strides = array<i32>} : memref<8x8x64xf32, #tpu.memory_space<vmem>>, vector<1x8x64xf32>,
    %c3_i32 = arith.constant 3 : i32
    %cst_38 = arith.constant dense<0.000000e+00> : vector<8x64xf32>
    %91 = tpu.matmul %86, %0, %cst_38 {dimension_numbers = #tpu.dot_dimension_numbers<[1], [0], [0], [1], [0, 0, 1, 1], [], []>} : vector<8x64xf32>, vector<64x64xf32>, vector<8x64xf32> -> vector<8x64xf32>
    %92 = arith.index_cast %c3_i32 : i32 to index
    %c0_39 = arith.constant 0 : index
    %c0_40 = arith.constant 0 : index
    %93 = vector.load %arg12[%92, %c0_39, %c0_40] : memref<8x8x64xf32, #tpu.memory_space<vmem>>, vector<1x8x64xf32>
    %94 = vector.shape_cast %93 : vector<1x8x64xf32> to vector<8x64xf32>
    %95 = arith.addf %94, %91 : vector<8x64xf32>
    %96 = vector.extract_strided_slice %95 {offsets = [0, 0], sizes = [8, 32], strides = [1, 1]} : vector<8x64xf32> to vector<8x32xf32>
    %97 = math.tanh %96 : vector<8x32xf32>
    %98 = arith.mulf %97, %5 : vector<8x32xf32>
    %cst_41 = arith.constant dense<0.000000e+00> : vector<8xf32>
    %99 = vector.multi_reduction <add>, %98, %cst_41 [1] : vector<8x32xf32> to vector<8xf32>
    %100 = vector.shape_cast %99 : vector<8xf32> to vector<8x1xf32>
    %101 = vector.broadcast %1 : f32 to vector<8x1xf32>
    %102 = arith.addf %100, %101 : vector<8x1xf32>
    %cst_42 = arith.constant 0.000000e+00 : f32
    %103 = vector.broadcast %cst_42 : f32 to vector<8x1xf32>
    %104 = arith.maximumf %102, %103 : vector<8x1xf32>
    %105 = vector.extract_strided_slice %95 {offsets = [0, 32], sizes = [8, 32], strides = [1, 1]} : vector<8x64xf32> to vector<8x32xf32>
    %106 = vector.broadcast %104 : vector<8x1xf32> to vector<8x32xf32>
    %107 = arith.mulf %106, %8 : vector<8x32xf32>
    %108 = arith.addf %105, %107 : vector<8x32xf32>
    %109 = math.tanh %108 : vector<8x32xf32>
    %110 = tpu.concatenate %97, %109 in 1 : vector<8x32xf32>, vector<8x32xf32> -> vector<8x64xf32>
    %111 = arith.index_cast %c3_i32 : i32 to index
    %c0_43 = arith.constant 0 : index
    %c0_44 = arith.constant 0 : index
    %112 = vector.load %arg12[%111, %c0_43, %c0_44] : memref<8x8x64xf32, #tpu.memory_space<vmem>>, vector<1x8x64xf32>
    %113 = vector.shape_cast %112 : vector<1x8x64xf32> to vector<8x64xf32>
    %114 = vector.shape_cast %110 : vector<8x64xf32> to vector<1x8x64xf32>
    tpu.vector_store %arg12[%111, %c0_43, %c0_44], %114 {strides = array<i32>} : memref<8x8x64xf32, #tpu.memory_space<vmem>>, vector<1x8x64xf32>,
    %c4_i32 = arith.constant 4 : i32
    %cst_45 = arith.constant dense<0.000000e+00> : vector<8x64xf32>
    %115 = tpu.matmul %110, %0, %cst_45 {dimension_numbers = #tpu.dot_dimension_numbers<[1], [0], [0], [1], [0, 0, 1, 1], [], []>} : vector<8x64xf32>, vector<64x64xf32>, vector<8x64xf32> -> vector<8x64xf32>
    %116 = arith.index_cast %c4_i32 : i32 to index
    %c0_46 = arith.constant 0 : index
    %c0_47 = arith.constant 0 : index
    %117 = vector.load %arg12[%116, %c0_46, %c0_47] : memref<8x8x64xf32, #tpu.memory_space<vmem>>, vector<1x8x64xf32>
    %118 = vector.shape_cast %117 : vector<1x8x64xf32> to vector<8x64xf32>
    %119 = arith.addf %118, %115 : vector<8x64xf32>
    %120 = vector.extract_strided_slice %119 {offsets = [0, 0], sizes = [8, 32], strides = [1, 1]} : vector<8x64xf32> to vector<8x32xf32>
    %121 = math.tanh %120 : vector<8x32xf32>
    %122 = arith.mulf %121, %5 : vector<8x32xf32>
    %cst_48 = arith.constant dense<0.000000e+00> : vector<8xf32>
    %123 = vector.multi_reduction <add>, %122, %cst_48 [1] : vector<8x32xf32> to vector<8xf32>
    %124 = vector.shape_cast %123 : vector<8xf32> to vector<8x1xf32>
    %125 = vector.broadcast %1 : f32 to vector<8x1xf32>
    %126 = arith.addf %124, %125 : vector<8x1xf32>
    %cst_49 = arith.constant 0.000000e+00 : f32
    %127 = vector.broadcast %cst_49 : f32 to vector<8x1xf32>
    %128 = arith.maximumf %126, %127 : vector<8x1xf32>
    %129 = vector.extract_strided_slice %119 {offsets = [0, 32], sizes = [8, 32], strides = [1, 1]} : vector<8x64xf32> to vector<8x32xf32>
    %130 = vector.broadcast %128 : vector<8x1xf32> to vector<8x32xf32>
    %131 = arith.mulf %130, %8 : vector<8x32xf32>
    %132 = arith.addf %129, %131 : vector<8x32xf32>
    %133 = math.tanh %132 : vector<8x32xf32>
    %134 = tpu.concatenate %121, %133 in 1 : vector<8x32xf32>, vector<8x32xf32> -> vector<8x64xf32>
    %135 = arith.index_cast %c4_i32 : i32 to index
    %c0_50 = arith.constant 0 : index
    %c0_51 = arith.constant 0 : index
    %136 = vector.load %arg12[%135, %c0_50, %c0_51] : memref<8x8x64xf32, #tpu.memory_space<vmem>>, vector<1x8x64xf32>
    %137 = vector.shape_cast %136 : vector<1x8x64xf32> to vector<8x64xf32>
    %138 = vector.shape_cast %134 : vector<8x64xf32> to vector<1x8x64xf32>
    tpu.vector_store %arg12[%135, %c0_50, %c0_51], %138 {strides = array<i32>} : memref<8x8x64xf32, #tpu.memory_space<vmem>>, vector<1x8x64xf32>,
    %c5_i32 = arith.constant 5 : i32
    %cst_52 = arith.constant dense<0.000000e+00> : vector<8x64xf32>
    %139 = tpu.matmul %134, %0, %cst_52 {dimension_numbers = #tpu.dot_dimension_numbers<[1], [0], [0], [1], [0, 0, 1, 1], [], []>} : vector<8x64xf32>, vector<64x64xf32>, vector<8x64xf32> -> vector<8x64xf32>
    %140 = arith.index_cast %c5_i32 : i32 to index
    %c0_53 = arith.constant 0 : index
    %c0_54 = arith.constant 0 : index
    %141 = vector.load %arg12[%140, %c0_53, %c0_54] : memref<8x8x64xf32, #tpu.memory_space<vmem>>, vector<1x8x64xf32>
    %142 = vector.shape_cast %141 : vector<1x8x64xf32> to vector<8x64xf32>
    %143 = arith.addf %142, %139 : vector<8x64xf32>
    %144 = vector.extract_strided_slice %143 {offsets = [0, 0], sizes = [8, 32], strides = [1, 1]} : vector<8x64xf32> to vector<8x32xf32>
    %145 = math.tanh %144 : vector<8x32xf32>
    %146 = arith.mulf %145, %5 : vector<8x32xf32>
    %cst_55 = arith.constant dense<0.000000e+00> : vector<8xf32>
    %147 = vector.multi_reduction <add>, %146, %cst_55 [1] : vector<8x32xf32> to vector<8xf32>
    %148 = vector.shape_cast %147 : vector<8xf32> to vector<8x1xf32>
    %149 = vector.broadcast %1 : f32 to vector<8x1xf32>
    %150 = arith.addf %148, %149 : vector<8x1xf32>
    %cst_56 = arith.constant 0.000000e+00 : f32
    %151 = vector.broadcast %cst_56 : f32 to vector<8x1xf32>
    %152 = arith.maximumf %150, %151 : vector<8x1xf32>
    %153 = vector.extract_strided_slice %143 {offsets = [0, 32], sizes = [8, 32], strides = [1, 1]} : vector<8x64xf32> to vector<8x32xf32>
    %154 = vector.broadcast %152 : vector<8x1xf32> to vector<8x32xf32>
    %155 = arith.mulf %154, %8 : vector<8x32xf32>
    %156 = arith.addf %153, %155 : vector<8x32xf32>
    %157 = math.tanh %156 : vector<8x32xf32>
    %158 = tpu.concatenate %145, %157 in 1 : vector<8x32xf32>, vector<8x32xf32> -> vector<8x64xf32>
    %159 = arith.index_cast %c5_i32 : i32 to index
    %c0_57 = arith.constant 0 : index
    %c0_58 = arith.constant 0 : index
    %160 = vector.load %arg12[%159, %c0_57, %c0_58] : memref<8x8x64xf32, #tpu.memory_space<vmem>>, vector<1x8x64xf32>
    %161 = vector.shape_cast %160 : vector<1x8x64xf32> to vector<8x64xf32>
    %162 = vector.shape_cast %158 : vector<8x64xf32> to vector<1x8x64xf32>
    tpu.vector_store %arg12[%159, %c0_57, %c0_58], %162 {strides = array<i32>} : memref<8x8x64xf32, #tpu.memory_space<vmem>>, vector<1x8x64xf32>,
    %c6_i32 = arith.constant 6 : i32
    %cst_59 = arith.constant dense<0.000000e+00> : vector<8x64xf32>
    %163 = tpu.matmul %158, %0, %cst_59 {dimension_numbers = #tpu.dot_dimension_numbers<[1], [0], [0], [1], [0, 0, 1, 1], [], []>} : vector<8x64xf32>, vector<64x64xf32>, vector<8x64xf32> -> vector<8x64xf32>
    %164 = arith.index_cast %c6_i32 : i32 to index
    %c0_60 = arith.constant 0 : index
    %c0_61 = arith.constant 0 : index
    %165 = vector.load %arg12[%164, %c0_60, %c0_61] : memref<8x8x64xf32, #tpu.memory_space<vmem>>, vector<1x8x64xf32>
    %166 = vector.shape_cast %165 : vector<1x8x64xf32> to vector<8x64xf32>
    %167 = arith.addf %166, %163 : vector<8x64xf32>
    %168 = vector.extract_strided_slice %167 {offsets = [0, 0], sizes = [8, 32], strides = [1, 1]} : vector<8x64xf32> to vector<8x32xf32>
    %169 = math.tanh %168 : vector<8x32xf32>
    %170 = arith.mulf %169, %5 : vector<8x32xf32>
    %cst_62 = arith.constant dense<0.000000e+00> : vector<8xf32>
    %171 = vector.multi_reduction <add>, %170, %cst_62 [1] : vector<8x32xf32> to vector<8xf32>
    %172 = vector.shape_cast %171 : vector<8xf32> to vector<8x1xf32>
    %173 = vector.broadcast %1 : f32 to vector<8x1xf32>
    %174 = arith.addf %172, %173 : vector<8x1xf32>
    %cst_63 = arith.constant 0.000000e+00 : f32
    %175 = vector.broadcast %cst_63 : f32 to vector<8x1xf32>
    %176 = arith.maximumf %174, %175 : vector<8x1xf32>
    %177 = vector.extract_strided_slice %167 {offsets = [0, 32], sizes = [8, 32], strides = [1, 1]} : vector<8x64xf32> to vector<8x32xf32>
    %178 = vector.broadcast %176 : vector<8x1xf32> to vector<8x32xf32>
    %179 = arith.mulf %178, %8 : vector<8x32xf32>
    %180 = arith.addf %177, %179 : vector<8x32xf32>
    %181 = math.tanh %180 : vector<8x32xf32>
    %182 = tpu.concatenate %169, %181 in 1 : vector<8x32xf32>, vector<8x32xf32> -> vector<8x64xf32>
    %183 = arith.index_cast %c6_i32 : i32 to index
    %c0_64 = arith.constant 0 : index
    %c0_65 = arith.constant 0 : index
    %184 = vector.load %arg12[%183, %c0_64, %c0_65] : memref<8x8x64xf32, #tpu.memory_space<vmem>>, vector<1x8x64xf32>
    %185 = vector.shape_cast %184 : vector<1x8x64xf32> to vector<8x64xf32>
    %186 = vector.shape_cast %182 : vector<8x64xf32> to vector<1x8x64xf32>
    tpu.vector_store %arg12[%183, %c0_64, %c0_65], %186 {strides = array<i32>} : memref<8x8x64xf32, #tpu.memory_space<vmem>>, vector<1x8x64xf32>,
    %c7_i32 = arith.constant 7 : i32
    %cst_66 = arith.constant dense<0.000000e+00> : vector<8x64xf32>
    %187 = tpu.matmul %182, %0, %cst_66 {dimension_numbers = #tpu.dot_dimension_numbers<[1], [0], [0], [1], [0, 0, 1, 1], [], []>} : vector<8x64xf32>, vector<64x64xf32>, vector<8x64xf32> -> vector<8x64xf32>
    %188 = arith.index_cast %c7_i32 : i32 to index
    %c0_67 = arith.constant 0 : index
    %c0_68 = arith.constant 0 : index
    %189 = vector.load %arg12[%188, %c0_67, %c0_68] : memref<8x8x64xf32, #tpu.memory_space<vmem>>, vector<1x8x64xf32>
    %190 = vector.shape_cast %189 : vector<1x8x64xf32> to vector<8x64xf32>
    %191 = arith.addf %190, %187 : vector<8x64xf32>
    %192 = vector.extract_strided_slice %191 {offsets = [0, 0], sizes = [8, 32], strides = [1, 1]} : vector<8x64xf32> to vector<8x32xf32>
    %193 = math.tanh %192 : vector<8x32xf32>
    %194 = arith.mulf %193, %5 : vector<8x32xf32>
    %cst_69 = arith.constant dense<0.000000e+00> : vector<8xf32>
    %195 = vector.multi_reduction <add>, %194, %cst_69 [1] : vector<8x32xf32> to vector<8xf32>
    %196 = vector.shape_cast %195 : vector<8xf32> to vector<8x1xf32>
    %197 = vector.broadcast %1 : f32 to vector<8x1xf32>
    %198 = arith.addf %196, %197 : vector<8x1xf32>
    %cst_70 = arith.constant 0.000000e+00 : f32
    %199 = vector.broadcast %cst_70 : f32 to vector<8x1xf32>
    %200 = arith.maximumf %198, %199 : vector<8x1xf32>
    %201 = vector.extract_strided_slice %191 {offsets = [0, 32], sizes = [8, 32], strides = [1, 1]} : vector<8x64xf32> to vector<8x32xf32>
    %202 = vector.broadcast %200 : vector<8x1xf32> to vector<8x32xf32>
    %203 = arith.mulf %202, %8 : vector<8x32xf32>
    %204 = arith.addf %201, %203 : vector<8x32xf32>
    %205 = math.tanh %204 : vector<8x32xf32>
    %206 = tpu.concatenate %193, %205 in 1 : vector<8x32xf32>, vector<8x32xf32> -> vector<8x64xf32>
    %207 = arith.index_cast %c7_i32 : i32 to index
    %c0_71 = arith.constant 0 : index
    %c0_72 = arith.constant 0 : index
    %208 = vector.load %arg12[%207, %c0_71, %c0_72] : memref<8x8x64xf32, #tpu.memory_space<vmem>>, vector<1x8x64xf32>
    %209 = vector.shape_cast %208 : vector<1x8x64xf32> to vector<8x64xf32>
    %210 = vector.shape_cast %206 : vector<8x64xf32> to vector<1x8x64xf32>
    tpu.vector_store %arg12[%207, %c0_71, %c0_72], %210 {strides = array<i32>} : memref<8x8x64xf32, #tpu.memory_space<vmem>>, vector<1x8x64xf32>,
    %c8_i32 = arith.constant 8 : i32
    %c0_73 = arith.constant 0 : index
    %c0_74 = arith.constant 0 : index
    %c0_75 = arith.constant 0 : index
    %211 = vector.load %arg12[%c0_73, %c0_74, %c0_75] : memref<8x8x64xf32, #tpu.memory_space<vmem>>, vector<8x8x64xf32>
    %c0_76 = arith.constant 0 : index
    %c0_77 = arith.constant 0 : index
    %212 = vector.load %arg7[%c0_76, %c0_77] : memref<1x64xf32, #tpu.memory_space<vmem>>, vector<1x64xf32>
    %213 = vector.shape_cast %212 : vector<1x64xf32> to vector<1x1x64xf32>
    %c0_78 = arith.constant 0 : index
    %c0_79 = arith.constant 0 : index
    %214 = vector.load %arg8[%c0_78, %c0_79] : memref<1x64xf32, #tpu.memory_space<vmem>>, vector<1x64xf32>
    %215 = vector.shape_cast %214 : vector<1x64xf32> to vector<1x1x64xf32>
    %216 = vector.broadcast %213 : vector<1x1x64xf32> to vector<8x8x64xf32>
    %217 = arith.mulf %211, %216 : vector<8x8x64xf32>
    %cst_80 = arith.constant dense<0.000000e+00> : vector<8x8xf32>
    %218 = vector.multi_reduction <add>, %217, %cst_80 [2] : vector<8x8x64xf32> to vector<8x8xf32>
    %219 = vector.broadcast %1 : f32 to vector<8x8xf32>
    %220 = arith.addf %218, %219 : vector<8x8xf32>
    %cst_81 = arith.constant 0.000000e+00 : f32
    %221 = vector.broadcast %cst_81 : f32 to vector<8x8xf32>
    %222 = arith.maximumf %220, %221 : vector<8x8xf32>
    %c0_82 = arith.constant 0 : index
    %c0_83 = arith.constant 0 : index
    %223 = vector.load %arg11[%c0_82, %c0_83] : memref<8x8xf32, #tpu.memory_space<vmem>>, vector<8x8xf32>
    tpu.vector_store %arg11[%c0_82, %c0_83], %222 {strides = array<i32>} : memref<8x8xf32, #tpu.memory_space<vmem>>, vector<8x8xf32>,
    %224 = vector.broadcast %215 : vector<1x1x64xf32> to vector<8x8x64xf32>
    %225 = arith.mulf %211, %224 : vector<8x8x64xf32>
    %cst_84 = arith.constant dense<0.000000e+00> : vector<8x8xf32>
    %226 = vector.multi_reduction <add>, %225, %cst_84 [2] : vector<8x8x64xf32> to vector<8x8xf32>
    %227 = vector.broadcast %2 : f32 to vector<8x8xf32>
    %228 = arith.addf %226, %227 : vector<8x8xf32>
    %cst_85 = arith.constant 0.000000e+00 : f32
    %229 = vector.broadcast %cst_85 : f32 to vector<8x8xf32>
    %230 = arith.maximumf %228, %229 : vector<8x8xf32>
    %c0_86 = arith.constant 0 : index
    %c0_87 = arith.constant 0 : index
    %231 = vector.load %arg10[%c0_86, %c0_87] : memref<8x8xf32, #tpu.memory_space<vmem>>, vector<8x8xf32>
    tpu.vector_store %arg10[%c0_86, %c0_87], %230 {strides = array<i32>} : memref<8x8xf32, #tpu.memory_space<vmem>>, vector<8x8xf32>,
    return
  }
  func.func @transform_0(%arg0: i32) -> (i32, i32, i32) {
    %c0_i32 = arith.constant 0 : i32
    %c0_i32_0 = arith.constant 0 : i32
    %c0_i32_1 = arith.constant 0 : i32
    return %c0_i32, %arg0, %c0_i32_0 : i32, i32, i32
  }
  func.func @transform_1(%arg0: i32) -> (i32, i32) {
    %c0_i32 = arith.constant 0 : i32
    %c0_i32_0 = arith.constant 0 : i32
    %c0_i32_1 = arith.constant 0 : i32
    return %c0_i32, %c0_i32_0 : i32, i32
  }
  func.func @transform_2(%arg0: i32) -> (i32, i32) {
    %c0_i32 = arith.constant 0 : i32
    %c0_i32_0 = arith.constant 0 : i32
    %c0_i32_1 = arith.constant 0 : i32
    return %c0_i32, %c0_i32_0 : i32, i32
  }
  func.func @transform_3(%arg0: i32) -> (i32, i32) {
    %c0_i32 = arith.constant 0 : i32
    %c0_i32_0 = arith.constant 0 : i32
    %c0_i32_1 = arith.constant 0 : i32
    return %c0_i32, %c0_i32_0 : i32, i32
  }
  func.func @transform_4(%arg0: i32) -> (i32, i32) {
    %c0_i32 = arith.constant 0 : i32
    %c0_i32_0 = arith.constant 0 : i32
    %c0_i32_1 = arith.constant 0 : i32
    return %c0_i32, %c0_i32_0 : i32, i32
  }
  func.func @transform_5(%arg0: i32) -> (i32, i32) {
    %c0_i32 = arith.constant 0 : i32
    %c0_i32_0 = arith.constant 0 : i32
    %c0_i32_1 = arith.constant 0 : i32
    return %c0_i32, %c0_i32_0 : i32, i32
  }
  func.func @transform_6(%arg0: i32) -> (i32, i32) {
    %c0_i32 = arith.constant 0 : i32
    %c0_i32_0 = arith.constant 0 : i32
    %c0_i32_1 = arith.constant 0 : i32
    return %c0_i32, %c0_i32_0 : i32, i32
  }
  func.func @transform_7(%arg0: i32) -> (i32, i32) {
    %c0_i32 = arith.constant 0 : i32
    %c0_i32_0 = arith.constant 0 : i32
    %c0_i32_1 = arith.constant 0 : i32
    return %c0_i32, %c0_i32_0 : i32, i32
  }
  func.func @transform_8(%arg0: i32) -> i32 {
    %c0_i32 = arith.constant 0 : i32
    %c0_i32_0 = arith.constant 0 : i32
    return %c0_i32 : i32
  }
  func.func @transform_9(%arg0: i32) -> (i32, i32) {
    %c0_i32 = arith.constant 0 : i32
    %c0_i32_0 = arith.constant 0 : i32
    return %c0_i32, %arg0 : i32, i32
  }
  func.func @transform_10(%arg0: i32) -> (i32, i32) {
    %c0_i32 = arith.constant 0 : i32
    %c0_i32_0 = arith.constant 0 : i32
    return %c0_i32, %arg0 : i32, i32
  }
}

</mosaic_0001>

<bundles_post_ra>
// kernel: rnn2_forward.1
= control target key start
LH: loop header
LB: loop body
LE: loop exit
PB: predicated region body
PF: predicated region fallthrough
CT: control target
= control target key end

     0   :  { %16 = vsyncpa [#allocation4], 0  ;;  %s747_s16 = smov [#allocation3]   ;;  %s1119_s0 = inlined_call_operand.vmem [shape: f32[8,8,4], index: 0, kind: input, shape index: {}]   ;;  %s1120_s1 = inlined_call_operand.vmem [shape: f32[4,64], index: 1, kind: input, shape index: {}]   ;;  %s1121_s2 = inlined_call_operand.vmem [shape: f32[1,64], index: 2, kind: input, shape index: {}]   ;;  %s1122_s3 = inlined_call_operand.vmem [shape: f32[64,64], index: 3, kind: input, shape index: {}]   ;;  %s1123_s4 = inlined_call_operand.vmem [shape: f32[1,32], index: 4, kind: input, shape index: {}]   ;;  %s1124_s5 = inlined_call_operand.vmem [shape: f32[1,32], index: 5, kind: input, shape index: {}]   ;;  %s1125_s6 = inlined_call_operand.vmem [shape: f32[1,64], index: 6, kind: input, shape index: {}]   ;;  %s1126_s7 = inlined_call_operand.vmem [shape: f32[1,64], index: 7, kind: input, shape index: {}]   ;;  %s1127_s8 = inlined_call_operand.vmem [shape: f32[2], index: 8, kind: input, shape index: {}]   ;;  %s1128_s9 = inlined_call_operand.vmem [shape: f32[8,8], index: 9, kind: output, shape index: {0}]   ;;  %s1129_s10 = inlined_call_operand.vmem [shape: f32[8,8], index: 10, kind: output, shape index: {1}]  }
   0x1   :  { %s38_s15 = sshll.u32 %s1127_s8, 4  ;;  %s39_s15 = int_to_ptr.vmem [resolvable:$true] %s38_s15 }
   0x2   :  { %41 = dma.vmem_to_smem %s39_s15, 16, %s747_s16, [#allocation4]  }
   0x3   :  { %745 = dma.done.wait [#allocation4], 16  }
   0x4   :  { %746 = vsyncadd [#allocation4], 4294967280 }
   0x5   :  { %46 = sfence }
   0x6   :  { %v811_v0 = vld [vmem:[%s1122_s3 + $0x38] sm:$0xff]  ;;  %v816_v1 = vld [vmem:[%s1122_s3 + $0x30] sm:$0xff]  ;;  %v73_v2 = vld [vmem:[%s1120_s1] sm:$0xf]  ;;  %vm103_vm0 = vcmask 1043456   ;;  %vm78_vm1 = vcmask 31744  }
   0x7   :  { %168 = vmatpush.msra.mxu1 %v811_v0  ;;  %677 = vmatpush.msk.msra.mxu0 %vm103_vm0, %v73_v2  ;;  %v65_v3 = vld [vmem:[%s1119_s0] sm:$0xff]  ;;  %v828_v4 = vld [vmem:[%s1122_s3 + $0x28] sm:$0xff]  ;;  %v845_v6 = vld [vmem:[%s1122_s3 + $0x18] sm:$0xff]  ;;  %v748_v10 = vmov 0.0   ;;  %vm148_vm2 = vcmask 523264   ;;  %vm184_vm3 = vcmask 261120  }
   0x8   :  { %678 = vmatmul.msk.f32.vlgmr.msra.gmra.mxu0 %vm78_vm1, %v65_v3  ;;  %211 = vmatpush.msra.mxu2 %v811_v0  ;;  %v836_v5 = vld [vmem:[%s1122_s3 + $0x20] sm:$0xff]  ;;  %v853_v7 = vld [vmem:[%s1122_s3 + $0x10] sm:$0xff]  ;;  %v861_v8 = vld [vmem:[%s1122_s3 + $0x8] sm:$0xff]  ;;  %vm573_vm4 = vcmask 1041409   ;;  %vm575_vm5 = vcmask 1042434   ;;  %vm577_vm6 = vcmask 1043459  }
   0x9   :  { %169 = vmatpush.msra.mxu1 %v816_v1  ;;  %253 = vmatpush.msra.mxu3 %v811_v0  ;;  %v869_v9 = vld [vmem:[%s1122_s3] sm:$0xff]  ;;  %v66_v27 = vld [vmem:[%s1119_s0 + $0x8] sm:$0xff]  ;;  %v67_v44 = vld [vmem:[%s1119_s0 + $0x10] sm:$0xff]  ;;  %vm579_vm7 = vcmask 1044484   ;;  %vm581_vm8 = vcmask 1045509   ;;  %vm583_vm9 = vcmask 1046534  }
   0xa   :  { %212 = vmatpush.msra.mxu2 %v816_v1  ;;  %v914_v11 = vld [vmem:[%s1121_s2] ss:$0 sm:$0xff]  ;;  %s55_s2 = sld [smem:[#allocation3]]  ;;  %v68_v61 = vld [vmem:[%s1119_s0 + $0x18] sm:$0xff]  ;;  %vm585_vm10 = vcmask 1047559   ;;  %vm588_vm11 = vcmask 64512  }
   0xb   :  { %170 = vmatpush.msra.mxu1 %v828_v4  ;;  %254 = vmatpush.msra.mxu3 %v816_v1  ;;  %v921_v17 = vld [vmem:[%s1123_s4] ss:$0 sm:$0xff]  ;;  %s749_s4 = smov 32  }
   0xc   :  { %213 = vmatpush.msra.mxu2 %v828_v4  ;;  %v930_v23 = vld [vmem:[%s1124_s5] ss:$0 sm:$0xff] }
   0xd   :  { %171 = vmatpush.msra.mxu1 %v836_v5  ;;  %255 = vmatpush.msra.mxu3 %v828_v4 }
   0xe   :  { %214 = vmatpush.msra.mxu2 %v836_v5 }
   0xf   :  { %172 = vmatpush.msra.mxu1 %v845_v6  ;;  %256 = vmatpush.msra.mxu3 %v836_v5 }
  0x10   :  { %215 = vmatpush.msra.mxu2 %v845_v6  ;;  %v925_v21 = vstv %s55_s2  ;;  %679 = vmatmul.msk.f32.gmra.mxu0 %vm78_vm1, %v66_v27 }
  0x11   :  { %173 = vmatpush.msra.mxu1 %v853_v7  ;;  %257 = vmatpush.msra.mxu3 %v845_v6 }
  0x12   :  { %216 = vmatpush.msra.mxu2 %v853_v7 }
  0x13   :  { %174 = vmatpush.msra.mxu1 %v861_v8  ;;  %258 = vmatpush.msra.mxu3 %v853_v7 }
  0x14   :  { %217 = vmatpush.msra.mxu2 %v861_v8 }
  0x15   :  { %175 = vmatpush.msra.mxu1 %v869_v9  ;;  %259 = vmatpush.msra.mxu3 %v861_v8 }
  0x16   :  { %176 = vmatmul.f32.vlgmr.msra.gmra.mxu1 %v748_v10  ;;  %218 = vmatpush.msra.mxu2 %v869_v9 }
  0x17   :  { %260 = vmatpush.msra.mxu3 %v869_v9  ;;  %295 = vmatpush.msrb.mxu1 %v811_v0 }
  0x18   :  { %337 = vmatpush.msrb.mxu2 %v811_v0  ;;  %680 = vmatmul.msk.f32.gmra.mxu0 %vm78_vm1, %v67_v44 }
  0x19   :  { %379 = vmatpush.msrb.mxu3 %v811_v0  ;;  %296 = vmatpush.msrb.mxu1 %v816_v1 }
  0x1a   :  { %338 = vmatpush.msrb.mxu2 %v816_v1 }
  0x1b   :  { %380 = vmatpush.msrb.mxu3 %v816_v1  ;;  %297 = vmatpush.msrb.mxu1 %v828_v4 }
  0x1c   :  { %339 = vmatpush.msrb.mxu2 %v828_v4 }
  0x1d   :  { %381 = vmatpush.msrb.mxu3 %v828_v4  ;;  %298 = vmatpush.msrb.mxu1 %v836_v5 }
  0x1e   :  { %340 = vmatpush.msrb.mxu2 %v836_v5 }
  0x1f   :  { %382 = vmatpush.msrb.mxu3 %v836_v5  ;;  %299 = vmatpush.msrb.mxu1 %v845_v6 }
  0x20   :  { %341 = vmatpush.msrb.mxu2 %v845_v6  ;;  %681 = vmatmul.msk.f32.gmra.mxu0 %vm78_vm1, %v68_v61 }
  0x21   :  { %383 = vmatpush.msrb.mxu3 %v845_v6  ;;  %300 = vmatpush.msrb.mxu1 %v853_v7 }
  0x22   :  { %342 = vmatpush.msrb.mxu2 %v853_v7 }
  0x23   :  { %384 = vmatpush.msrb.mxu3 %v853_v7  ;;  %301 = vmatpush.msrb.mxu1 %v861_v8 }
  0x24   :  { %343 = vmatpush.msrb.mxu2 %v861_v8 }
  0x25   :  { %385 = vmatpush.msrb.mxu3 %v861_v8  ;;  %302 = vmatpush.msrb.mxu1 %v869_v9 }
  0x26   :  { %344 = vmatpush.msrb.mxu2 %v869_v9 }
  0x27   :  { %386 = vmatpush.msrb.mxu3 %v869_v9  ;;  %421 = vmatpush.msra.mxu1 %v811_v0 }
  0x29   :  { %422 = vmatpush.msra.mxu1 %v816_v1 }
  0x2b   :  { %423 = vmatpush.msra.mxu1 %v828_v4 }
  0x2d   :  { %424 = vmatpush.msra.mxu1 %v836_v5 }
  0x2f   :  { %425 = vmatpush.msra.mxu1 %v845_v6 }
  0x31   :  { %426 = vmatpush.msra.mxu1 %v853_v7 }
  0x33   :  { %427 = vmatpush.msra.mxu1 %v861_v8 }
  0x35   :  { %428 = vmatpush.msra.mxu1 %v869_v9 }
  0x85   :  { %v124_v12 = vpop.f32.mrf.mxu0 }
  0x86   :  { %v125_v13 = vadd.f32 %v914_v11, %v124_v12 }
  0x88   :  { %149 = vst.msk [vmem:[#allocation2] sm:$0xff] %vm148_vm2, %v125_v13 }
  0x8d   :  { %v127_v32 = vpop.f32.mrf.mxu0 }
  0x8e   :  { %v128_v33 = vadd.f32 %v914_v11, %v127_v32 }
  0x8f   :  { %v180_v14 = vld [vmem:[#allocation2] sm:$0xff] }
  0x90   :  { %150 = vst.msk [vmem:[#allocation2 + $0x8] sm:$0xff] %vm148_vm2, %v128_v33 }
  0x93   :  { %v177_v15 = vpop.f32.mrf.mxu1 }
  0x94   :  { %v181_v16 = vadd.f32 %v180_v14, %v177_v15  ;;  %v69_v15 = vld [vmem:[%s1119_s0 + $0x20] sm:$0xff] }
  0x95   :  { %v130_v49 = vpop.f32.mrf.mxu0  ;;  %682 = vmatmul.msk.f32.gmra.mxu0 %vm78_vm1, %v69_v15 }
  0x96   :  { %701 = vtanh.f32 %v181_v16  ;;  %v131_v50 = vadd.f32 %v914_v11, %v130_v49 }
  0x97   :  { %v224_v34 = vld [vmem:[#allocation2 + $0x8] sm:$0xff] }
  0x98   :  { %151 = vst.msk [vmem:[#allocation2 + $0x10] sm:$0xff] %vm148_vm2, %v131_v50 }
  0x9c   :  { %v702_v18 = vpop.eup %701 }
  0x9d   :  { %v183_v19 = vmul.f32 %v702_v18, %v921_v17  ;;  %v133_v2 = vpop.f32.mrf.mxu0 }
  0x9e   :  { %v134_v3 = vadd.f32 %v914_v11, %v133_v2 }
  0x9f   :  { %v185_v20 = vsel %vm184_vm3, %v183_v19, 0.0  ;;  %v266_v51 = vld [vmem:[#allocation2 + $0x10] sm:$0xff] }
  0xa0   :  { %186 = vadd.xlane.f32.xlu0 %v185_v20  ;;  %152 = vst.msk [vmem:[#allocation2 + $0x18] sm:$0xff] %vm148_vm2, %v134_v3 }
 0x113   :  { %v187_v22 = vpop.xlane.xlu0 %186 }
 0x114   :  { %v189_v24 = vadd.f32 %v925_v21, %v187_v22  ;;  %v136_v22 = vpop.f32.mrf.mxu0 }
 0x116   :  { %v190_v25 = vmax.f32 %v189_v24, 0.0  ;;  %v137_v24 = vadd.f32 %v914_v11, %v136_v22 }
 0x118   :  { %v191_v26 = vmul.f32 %v930_v23, %v190_v25  ;;  %153 = vst.msk [vmem:[#allocation2 + $0x20] sm:$0xff] %vm148_vm2, %v137_v24 }
 0x11a   :  { %193 = vrot.lane.b32.xlu0 %v191_v26, %s749_s4 }
 0x11f   :  { %v350_v25 = vld [vmem:[#allocation2 + $0x20] sm:$0xff] }
 0x18c   :  { %v194_v28 = vpop.permute.xlu0 %193 }
 0x18d   :  { %v196_v29 = vadd.f32 %v194_v28, %v181_v16 }
 0x18f   :  { %703 = vtanh.f32 %v196_v29 }
 0x195   :  { %v704_v30 = vpop.eup %703 }
 0x196   :  { %v198_v31 = vsel %vm184_vm3, %v702_v18, %v704_v30 }
 0x197   :  { %199 = vst.msk [vmem:[#allocation2] sm:$0xff] %vm148_vm2, %v198_v31  ;;  %686 = vmatmul.msk.f32.vlgmr.msra.gmra.mxu2 %vm148_vm2, %v198_v31 }
 0x198   :  { %463 = vmatpush.msra.mxu2 %v811_v0 }
 0x19a   :  { %464 = vmatpush.msra.mxu2 %v816_v1 }
 0x19c   :  { %465 = vmatpush.msra.mxu2 %v828_v4  ;;  %v308_v4 = vld [vmem:[#allocation2 + $0x18] sm:$0xff] }
 0x19e   :  { %466 = vmatpush.msra.mxu2 %v836_v5 }
 0x1a0   :  { %467 = vmatpush.msra.mxu2 %v845_v6 }
 0x1a2   :  { %468 = vmatpush.msra.mxu2 %v853_v7 }
 0x1a4   :  { %469 = vmatpush.msra.mxu2 %v861_v8 }
 0x1a6   :  { %470 = vmatpush.msra.mxu2 %v869_v9 }
 0x21a   :  { %v220_v35 = vpop.f32.mrf.mxu2 }
 0x21b   :  { %v225_v36 = vadd.f32 %v224_v34, %v220_v35  ;;  %v70_v35 = vld [vmem:[%s1119_s0 + $0x28] sm:$0xff] }
 0x21c   :  { %683 = vmatmul.msk.f32.gmra.mxu0 %vm78_vm1, %v70_v35 }
 0x21d   :  { %705 = vtanh.f32 %v225_v36 }
 0x223   :  { %v706_v37 = vpop.eup %705 }
 0x224   :  { %v227_v38 = vmul.f32 %v706_v37, %v921_v17 }
 0x226   :  { %v228_v39 = vsel %vm184_vm3, %v227_v38, 0.0 }
 0x227   :  { %229 = vadd.xlane.f32.xlu1 %v228_v39 }
 0x29a   :  { %v230_v40 = vpop.xlane.xlu1 %229 }
 0x29b   :  { %v231_v41 = vadd.f32 %v230_v40, %v925_v21  ;;  %v139_v40 = vpop.f32.mrf.mxu0 }
 0x29d   :  { %v232_v42 = vmax.f32 %v231_v41, 0.0  ;;  %v140_v41 = vadd.f32 %v914_v11, %v139_v40 }
 0x29f   :  { %v233_v43 = vmul.f32 %v930_v23, %v232_v42  ;;  %154 = vst.msk [vmem:[#allocation2 + $0x28] sm:$0xff] %vm148_vm2, %v140_v41 }
 0x2a1   :  { %235 = vrot.lane.b32.xlu1 %v233_v43, %s749_s4 }
 0x2a6   :  { %v392_v42 = vld [vmem:[#allocation2 + $0x28] sm:$0xff] }
 0x313   :  { %v236_v45 = vpop.permute.xlu1 %235 }
 0x314   :  { %v238_v46 = vadd.f32 %v236_v45, %v225_v36 }
 0x316   :  { %707 = vtanh.f32 %v238_v46 }
 0x31c   :  { %v708_v47 = vpop.eup %707 }
 0x31d   :  { %v240_v48 = vsel %vm184_vm3, %v706_v37, %v708_v47 }
 0x31e   :  { %241 = vst.msk [vmem:[#allocation2 + $0x8] sm:$0xff] %vm148_vm2, %v240_v48  ;;  %687 = vmatmul.msk.f32.vlgmr.msra.gmra.mxu3 %vm148_vm2, %v240_v48 }
 0x3a1   :  { %v262_v52 = vpop.f32.mrf.mxu3 }
 0x3a2   :  { %v267_v53 = vadd.f32 %v266_v51, %v262_v52  ;;  %v71_v52 = vld [vmem:[%s1119_s0 + $0x30] sm:$0xff] }
 0x3a3   :  { %684 = vmatmul.msk.f32.gmra.mxu0 %vm78_vm1, %v71_v52 }
 0x3a4   :  { %709 = vtanh.f32 %v267_v53 }
 0x3aa   :  { %v710_v54 = vpop.eup %709 }
 0x3ab   :  { %v269_v55 = vmul.f32 %v710_v54, %v921_v17 }
 0x3ad   :  { %v270_v56 = vsel %vm184_vm3, %v269_v55, 0.0 }
 0x3ae   :  { %271 = vadd.xlane.f32.xlu2 %v270_v56 }
 0x421   :  { %v272_v57 = vpop.xlane.xlu2 %271 }
 0x422   :  { %v273_v58 = vadd.f32 %v272_v57, %v925_v21  ;;  %v142_v57 = vpop.f32.mrf.mxu0 }
 0x424   :  { %v274_v59 = vmax.f32 %v273_v58, 0.0  ;;  %v143_v58 = vadd.f32 %v914_v11, %v142_v57 }
 0x426   :  { %v275_v60 = vmul.f32 %v930_v23, %v274_v59  ;;  %155 = vst.msk [vmem:[#allocation2 + $0x30] sm:$0xff] %vm148_vm2, %v143_v58 }
 0x428   :  { %277 = vrot.lane.b32.xlu2 %v275_v60, %s749_s4 }
 0x42d   :  { %v434_v59 = vld [vmem:[#allocation2 + $0x30] sm:$0xff] }
 0x482   :  { %v278_v62 = vpop.permute.xlu2 %277 }
 0x483   :  { %v280_v63 = vadd.f32 %v278_v62, %v267_v53 }
 0x485   :  { %711 = vtanh.f32 %v280_v63 }
 0x48b   :  { %v712_v0 = vpop.eup %711 }
 0x48c   :  { %v282_v1 = vsel %vm184_vm3, %v710_v54, %v712_v0 }
 0x48d   :  { %283 = vst.msk [vmem:[#allocation2 + $0x10] sm:$0xff] %vm148_vm2, %v282_v1  ;;  %688 = vmatmul.msk.f32.vlgmr.msrb.gmra.mxu1 %vm148_vm2, %v282_v1 }
 0x50a   :  { %v304_v5 = vpop.f32.mrf.mxu1 }
 0x50b   :  { %v309_v6 = vadd.f32 %v308_v4, %v304_v5  ;;  %v1027_v5 = vld [vmem:[#allocation2 + $0x8] sm:$0xff] }
 0x50d   :  { %713 = vtanh.f32 %v309_v6 }
 0x513   :  { %v714_v7 = vpop.eup %713 }
 0x514   :  { %v311_v8 = vmul.f32 %v714_v7, %v921_v17 }
 0x516   :  { %v312_v9 = vsel %vm184_vm3, %v311_v8, 0.0 }
 0x517   :  { %313 = vadd.xlane.f32.xlu0 %v312_v9 }
 0x58a   :  { %v314_v10 = vpop.xlane.xlu0 %313 }
 0x58b   :  { %v315_v12 = vadd.f32 %v314_v10, %v925_v21 }
 0x58d   :  { %v316_v13 = vmax.f32 %v315_v12, 0.0 }
 0x58f   :  { %v317_v14 = vmul.f32 %v930_v23, %v316_v13  ;;  %v72_v13 = vld [vmem:[%s1119_s0 + $0x38] sm:$0xff] }
 0x590   :  { %685 = vmatmul.msk.f32.gmra.mxu0 %vm78_vm1, %v72_v13 }
 0x591   :  { %319 = vrot.lane.b32.xlu2 %v317_v14, %s749_s4 }
 0x5eb   :  { %v320_v16 = vpop.permute.xlu2 %319 }
 0x5ec   :  { %v322_v18 = vadd.f32 %v320_v16, %v309_v6  ;;  %v1032_v6 = vld [vmem:[%s1126_s7] ss:$0 sm:$0xff] }
 0x5ee   :  { %715 = vtanh.f32 %v322_v18 }
 0x5f4   :  { %v716_v19 = vpop.eup %715 }
 0x5f5   :  { %v324_v20 = vsel %vm184_vm3, %v714_v7, %v716_v19  ;;  %v594_v7 = vmul.f32 %v1032_v6, %v1027_v5 }
 0x5f6   :  { %325 = vst.msk [vmem:[#allocation2 + $0x18] sm:$0xff] %vm148_vm2, %v324_v20  ;;  %689 = vmatmul.msk.f32.vlgmr.msrb.gmra.mxu2 %vm148_vm2, %v324_v20 }
 0x5f7   :  { %v604_v8 = vsel %vm148_vm2, %v594_v7, 0.0 }
 0x60d   :  { %v145_v19 = vpop.f32.mrf.mxu0 }
 0x60e   :  { %v146_v20 = vadd.f32 %v914_v11, %v145_v19  ;;  %v563_v19 = vlaneseq }
 0x610   :  { %156 = vst.msk [vmem:[#allocation2 + $0x38] sm:$0xff] %vm148_vm2, %v146_v20 }
 0x617   :  { %v476_v22 = vld [vmem:[#allocation2 + $0x38] sm:$0xff] }
 0x679   :  { %v346_v26 = vpop.f32.mrf.mxu2 }
 0x67a   :  { %v351_v27 = vadd.f32 %v350_v25, %v346_v26 }
 0x67c   :  { %717 = vtanh.f32 %v351_v27 }
 0x682   :  { %v718_v28 = vpop.eup %717 }
 0x683   :  { %v353_v29 = vmul.f32 %v718_v28, %v921_v17 }
 0x685   :  { %v354_v30 = vsel %vm184_vm3, %v353_v29, 0.0  ;;  %v700_v29 = vld [vmem:[%s1125_s6] ss:$0 sm:$0xff]  ;;  %s676_s6 = sld [smem:[#allocation3 + $0x1]] }
 0x686   :  { %355 = vadd.xlane.f32.xlu1 %v354_v30  ;;  %v494_v30 = vld [vmem:[#allocation2] sm:$0xff] }
 0x6f9   :  { %v356_v31 = vpop.xlane.xlu1 %355 }
 0x6fa   :  { %v357_v32 = vadd.f32 %v356_v31, %v925_v21  ;;  %v507_v31 = vmul.f32 %v700_v29, %v494_v30 }
 0x6fc   :  { %v358_v33 = vmax.f32 %v357_v32, 0.0  ;;  %v515_v11 = vsel %vm148_vm2, %v507_v31, 0.0  ;;  %v593_v32 = vmul.f32 %v1032_v6, %v494_v30 }
 0x6fe   :  { %v359_v34 = vmul.f32 %v930_v23, %v358_v33  ;;  %v601_v33 = vsel %vm148_vm2, %v593_v32, 0.0 }
 0x700   :  { %361 = vrot.lane.b32.xlu2 %v359_v34, %s749_s4  ;;  %v496_v34 = vld [vmem:[#allocation2 + $0x10] sm:$0xff] }
 0x701   :  { %v509_v35 = vmul.f32 %v700_v29, %v496_v34 }
 0x75a   :  { %v362_v36 = vpop.permute.xlu2 %361 }
 0x75b   :  { %v364_v37 = vadd.f32 %v362_v36, %v351_v27  ;;  %v595_v36 = vmul.f32 %v1032_v6, %v496_v34 }
 0x75d   :  { %719 = vtanh.f32 %v364_v37  ;;  %v607_v37 = vsel %vm148_vm2, %v595_v36, 0.0 }
 0x763   :  { %v720_v38 = vpop.eup %719 }
 0x764   :  { %v366_v39 = vsel %vm184_vm3, %v718_v28, %v720_v38  ;;  %v497_v38 = vld [vmem:[#allocation2 + $0x18] sm:$0xff] }
 0x765   :  { %367 = vst.msk [vmem:[#allocation2 + $0x20] sm:$0xff] %vm148_vm2, %v366_v39  ;;  %690 = vmatmul.msk.f32.vlgmr.msrb.gmra.mxu3 %vm148_vm2, %v366_v39  ;;  %v510_v39 = vmul.f32 %v700_v29, %v497_v38  ;;  %v596_v41 = vmul.f32 %v1032_v6, %v497_v38 }
 0x767   :  { %v524_v40 = vsel %vm148_vm2, %v510_v39, 0.0 }
 0x7e8   :  { %v388_v43 = vpop.f32.mrf.mxu3 }
 0x7e9   :  { %v393_v44 = vadd.f32 %v392_v42, %v388_v43  ;;  %v610_v42 = vsel %vm148_vm2, %v596_v41, 0.0  ;;  %v498_v43 = vld [vmem:[#allocation2 + $0x20] sm:$0xff] }
 0x7eb   :  { %721 = vtanh.f32 %v393_v44 }
 0x7f1   :  { %v722_v45 = vpop.eup %721 }
 0x7f2   :  { %v395_v46 = vmul.f32 %v722_v45, %v921_v17 }
 0x7f4   :  { %v396_v47 = vsel %vm184_vm3, %v395_v46, 0.0 }
 0x7f5   :  { %397 = vadd.xlane.f32.xlu2 %v396_v47 }
 0x868   :  { %v398_v48 = vpop.xlane.xlu2 %397 }
 0x869   :  { %v399_v49 = vadd.f32 %v398_v48, %v925_v21 }
 0x86b   :  { %v400_v50 = vmax.f32 %v399_v49, 0.0 }
 0x86d   :  { %v401_v51 = vmul.f32 %v930_v23, %v400_v50 }
 0x86f   :  { %403 = vrot.lane.b32.xlu0 %v401_v51, %s749_s4 }
 0x8e1   :  { %v404_v53 = vpop.permute.xlu0 %403 }
 0x8e2   :  { %v406_v54 = vadd.f32 %v404_v53, %v393_v44  ;;  %v597_v44 = vmul.f32 %v1032_v6, %v498_v43  ;;  %v508_v53 = vmul.f32 %v700_v29, %v1027_v5 }
 0x8e4   :  { %723 = vtanh.f32 %v406_v54  ;;  %v518_v54 = vsel %vm148_vm2, %v508_v53, 0.0 }
 0x8ea   :  { %v724_v55 = vpop.eup %723 }
 0x8eb   :  { %v408_v56 = vsel %vm184_vm3, %v722_v45, %v724_v55  ;;  %v613_v45 = vsel %vm148_vm2, %v597_v44, 0.0  ;;  %v511_v55 = vmul.f32 %v700_v29, %v498_v43 }
 0x8ec   :  { %409 = vst.msk [vmem:[#allocation2 + $0x28] sm:$0xff] %vm148_vm2, %v408_v56  ;;  %691 = vmatmul.msk.f32.vlgmr.msra.gmra.mxu1 %vm148_vm2, %v408_v56 }
 0x8ed   :  { %v527_v56 = vsel %vm148_vm2, %v511_v55, 0.0 }
 0x8f3   :  { %v1037_v9 = vld [vmem:[#allocation2 + $0x28] sm:$0xff] }
 0x8f4   :  { %v598_v10 = vmul.f32 %v1032_v6, %v1037_v9  ;;  %v512_v57 = vmul.f32 %v700_v29, %v1037_v9 }
 0x8f6   :  { %v616_v12 = vsel %vm148_vm2, %v598_v10, 0.0  ;;  %v530_v58 = vsel %vm148_vm2, %v512_v57, 0.0 }
 0x969   :  { %v430_v60 = vpop.f32.mrf.mxu1 }
 0x96a   :  { %v435_v61 = vadd.f32 %v434_v59, %v430_v60 }
 0x96c   :  { %725 = vtanh.f32 %v435_v61 }
 0x972   :  { %v726_v62 = vpop.eup %725 }
 0x973   :  { %v437_v63 = vmul.f32 %v726_v62, %v921_v17 }
 0x975   :  { %v438_v0 = vsel %vm184_vm3, %v437_v63, 0.0 }
 0x976   :  { %439 = vadd.xlane.f32.xlu1 %v438_v0 }
 0x9e9   :  { %v440_v1 = vpop.xlane.xlu1 %439 }
 0x9ea   :  { %v441_v2 = vadd.f32 %v440_v1, %v925_v21 }
 0x9ec   :  { %v442_v3 = vmax.f32 %v441_v2, 0.0 }
 0x9ee   :  { %v443_v4 = vmul.f32 %v930_v23, %v442_v3 }
 0x9f0   :  { %445 = vrot.lane.b32.xlu1 %v443_v4, %s749_s4 }
 0xa1a   :  { %605 = vadd.xlane.f32.xlu1 %v604_v8 }
 0xa22   :  { %617 = vadd.xlane.f32.xlu1 %v616_v12 }
 0xa62   :  { %v446_v14 = vpop.permute.xlu1 %445 }
 0xa63   :  { %v448_v15 = vadd.f32 %v446_v14, %v435_v61 }
 0xa65   :  { %727 = vtanh.f32 %v448_v15 }
 0xa6b   :  { %v728_v16 = vpop.eup %727 }
 0xa6c   :  { %v450_v18 = vsel %vm184_vm3, %v726_v62, %v728_v16 }
 0xa6d   :  { %451 = vst.msk [vmem:[#allocation2 + $0x30] sm:$0xff] %vm148_vm2, %v450_v18  ;;  %692 = vmatmul.msk.f32.vlgmr.msra.gmra.mxu2 %vm148_vm2, %v450_v18 }
 0xa74   :  { %v500_v46 = vld [vmem:[#allocation2 + $0x30] sm:$0xff] }
 0xa75   :  { %v513_v47 = vmul.f32 %v700_v29, %v500_v46  ;;  %v599_v59 = vmul.f32 %v1032_v6, %v500_v46 }
 0xa77   :  { %v533_v48 = vsel %vm148_vm2, %v513_v47, 0.0 }
 0xa8d   :  { %v606_v15 = vpop.xlane.xlu1 %605 }
 0xa95   :  { %v618_v30 = vpop.xlane.xlu1 %617 }
 0xaf0   :  { %v472_v24 = vpop.f32.mrf.mxu2 }
 0xaf1   :  { %v477_v25 = vadd.f32 %v476_v22, %v472_v24  ;;  %v625_v22 = vstv %s676_s6 }
 0xaf2   :  { %v631_v38 = vadd.f32 %v625_v22, %v618_v30 }
 0xaf3   :  { %729 = vtanh.f32 %v477_v25 }
 0xaf9   :  { %v730_v26 = vpop.eup %729 }
 0xafa   :  { %v479_v27 = vmul.f32 %v730_v26, %v921_v17  ;;  %v521_v17 = vsel %vm148_vm2, %v509_v35, 0.0 }
 0xafc   :  { %v480_v28 = vsel %vm184_vm3, %v479_v27, 0.0 }
 0xafd   :  { %481 = vadd.xlane.f32.xlu2 %v480_v28  ;;  %v1086_v28 = vand.u32 127, %v563_v19 }
 0xb05   :  { %516 = vadd.xlane.f32.xlu2 %v515_v11 }
 0xb0d   :  { %602 = vadd.xlane.f32.xlu2 %v601_v33 }
 0xb15   :  { %522 = vadd.xlane.f32.xlu2 %v521_v17 }
 0xb1d   :  { %608 = vadd.xlane.f32.xlu2 %v607_v37 }
 0xb25   :  { %525 = vadd.xlane.f32.xlu2 %v524_v40 }
 0xb2d   :  { %611 = vadd.xlane.f32.xlu2 %v610_v42 }
 0xb35   :  { %614 = vadd.xlane.f32.xlu2 %v613_v45 }
 0xb3d   :  { %534 = vadd.xlane.f32.xlu2 %v533_v48 }
 0xb70   :  { %v482_v49 = vpop.xlane.xlu2 %481 }
 0xb71   :  { %v483_v50 = vadd.f32 %v482_v49, %v925_v21 }
 0xb73   :  { %v484_v51 = vmax.f32 %v483_v50, 0.0 }
 0xb75   :  { %v485_v52 = vmul.f32 %v930_v23, %v484_v51  ;;  %v619_v23 = vsel %vm148_vm2, %v599_v59, 0.0 }
 0xb77   :  { %487 = vrot.lane.b32.xlu0 %v485_v52, %s749_s4  ;;  %v639_v52 = vmax.f32 %v631_v38, 0.0 }
 0xb78   :  { %v517_v5 = vpop.xlane.xlu2 %516 }
 0xb79   :  { %v539_v20 = vadd.f32 %v517_v5, %v925_v21 }
 0xb7b   :  { %v547_v31 = vmax.f32 %v539_v20, 0.0 }
 0xb7d   :  { %v565_v43 = vperm.slane %v547_v31, %v1086_v28 }
 0xb80   :  { %v603_v7 = vpop.xlane.xlu2 %602 }
 0xb81   :  { %v626_v24 = vadd.f32 %v625_v22, %v603_v7 }
 0xb83   :  { %v634_v34 = vmax.f32 %v626_v24, 0.0 }
 0xb85   :  { %v650_v48 = vperm.slane %v634_v34, %v1086_v28 }
 0xb88   :  { %v523_v8 = vpop.xlane.xlu2 %522 }
 0xb90   :  { %v609_v9 = vpop.xlane.xlu2 %608 }
 0xb91   :  { %v628_v27 = vadd.f32 %v625_v22, %v609_v9 }
 0xb93   :  { %v636_v40 = vmax.f32 %v628_v27, 0.0 }
 0xb98   :  { %v526_v12 = vpop.xlane.xlu2 %525 }
 0xb99   :  { %v542_v35 = vadd.f32 %v526_v12, %v925_v21 }
 0xb9b   :  { %v550_v49 = vmax.f32 %v542_v35, 0.0 }
 0xba0   :  { %v612_v14 = vpop.xlane.xlu2 %611 }
 0xba1   :  { %519 = vadd.xlane.f32.xlu0 %v518_v54  ;;  %v629_v11 = vadd.f32 %v625_v22, %v612_v14  ;;  %v652_v54 = vperm.slane %v636_v40, %v1086_v28 }
 0xba3   :  { %v637_v44 = vmax.f32 %v629_v11, 0.0 }
 0xba5   :  { %v653_v57 = vperm.slane %v637_v44, %v1086_v28 }
 0xba8   :  { %v615_v18 = vpop.xlane.xlu2 %614 }
 0xba9   :  { %528 = vadd.xlane.f32.xlu0 %v527_v56  ;;  %v630_v32 = vadd.f32 %v625_v22, %v615_v18 }
 0xbab   :  { %v638_v45 = vmax.f32 %v630_v32, 0.0 }
 0xbb0   :  { %v535_v41 = vpop.xlane.xlu2 %534 }
 0xbb1   :  { %531 = vadd.xlane.f32.xlu0 %v530_v58  ;;  %v545_v55 = vadd.f32 %v535_v41, %v925_v21  ;;  %v654_v58 = vperm.slane %v638_v45, %v1086_v28 }
 0xbb9   :  { %620 = vadd.xlane.f32.xlu0 %v619_v23 }
 0xbe9   :  { %v488_v60 = vpop.permute.xlu0 %487 }
 0xbea   :  { %v490_v61 = vadd.f32 %v488_v60, %v477_v25 }
 0xbec   :  { %731 = vtanh.f32 %v490_v61 }
 0xbf2   :  { %v732_v62 = vpop.eup %731 }
 0xbf3   :  { %v492_v63 = vsel %vm184_vm3, %v730_v26, %v732_v62  ;;  %v541_v26 = vadd.f32 %v523_v8, %v925_v21  ;;  %v568_v62 = vperm.slane %v550_v49, %v1086_v28 }
 0xbf4   :  { %493 = vst.msk [vmem:[#allocation2 + $0x38] sm:$0xff] %vm148_vm2, %v492_v63 }
 0xbf5   :  { %v549_v39 = vmax.f32 %v541_v26, 0.0 }
 0xbf7   :  { %v567_v53 = vperm.slane %v549_v39, %v1086_v28 }
 0xbfb   :  { %v501_v0 = vld [vmem:[#allocation2 + $0x38] sm:$0xff] }
 0xbfc   :  { %v514_v1 = vmul.f32 %v700_v29, %v501_v0  ;;  %v600_v2 = vmul.f32 %v1032_v6, %v501_v0  ;;  %v627_v29 = vadd.f32 %v625_v22, %v606_v15  ;;  %v655_v0 = vperm.slane %v639_v52, %v1086_v28 }
 0xbfe   :  { %v536_v3 = vsel %vm148_vm2, %v514_v1, 0.0  ;;  %v622_v4 = vsel %vm148_vm2, %v600_v2, 0.0  ;;  %v635_v42 = vmax.f32 %v627_v29, 0.0  ;;  %v553_v2 = vmax.f32 %v545_v55, 0.0 }
 0xbff   :  { %537 = vadd.xlane.f32.xlu1 %v536_v3  ;;  %623 = vadd.xlane.f32.xlu2 %v622_v4 }
 0xc00   :  { %v651_v56 = vperm.slane %v635_v42, %v1086_v28  ;;  %v571_v18 = vperm.slane %v553_v2, %v1086_v28 }
 0xc02   :  { %v658_v61 = vsel %vm573_vm4, %v651_v56, %v650_v48 }
 0xc03   :  { %v659_v1 = vsel %vm575_vm5, %v652_v54, %v658_v61 }
 0xc04   :  { %v660_v5 = vsel %vm577_vm6, %v653_v57, %v659_v1 }
 0xc14   :  { %v520_v10 = vpop.xlane.xlu0 %519 }
 0xc15   :  { %v540_v6 = vadd.f32 %v520_v10, %v925_v21  ;;  %v661_v10 = vsel %vm579_vm7, %v654_v58, %v660_v5 }
 0xc17   :  { %v548_v25 = vmax.f32 %v540_v6, 0.0  ;;  %v662_v6 = vsel %vm581_vm8, %v655_v0, %v661_v10 }
 0xc19   :  { %v566_v17 = vperm.slane %v548_v25, %v1086_v28 }
 0xc1b   :  { %v574_v50 = vsel %vm573_vm4, %v566_v17, %v565_v43 }
 0xc1c   :  { %v529_v13 = vpop.xlane.xlu0 %528  ;;  %v576_v59 = vsel %vm575_vm5, %v567_v53, %v574_v50 }
 0xc1d   :  { %v543_v33 = vadd.f32 %v529_v13, %v925_v21  ;;  %v578_v7 = vsel %vm577_vm6, %v568_v62, %v576_v59 }
 0xc1f   :  { %v551_v46 = vmax.f32 %v543_v33, 0.0 }
 0xc21   :  { %v569_v23 = vperm.slane %v551_v46, %v1086_v28 }
 0xc23   :  { %v580_v12 = vsel %vm579_vm7, %v569_v23, %v578_v7 }
 0xc24   :  { %v532_v16 = vpop.xlane.xlu0 %531 }
 0xc25   :  { %v544_v36 = vadd.f32 %v532_v16, %v925_v21 }
 0xc27   :  { %v552_v51 = vmax.f32 %v544_v36, 0.0 }
 0xc29   :  { %v570_v63 = vperm.slane %v552_v51, %v1086_v28 }
 0xc2b   :  { %v582_v14 = vsel %vm581_vm8, %v570_v63, %v580_v12 }
 0xc2c   :  { %v621_v37 = vpop.xlane.xlu0 %620 }
 0xc2d   :  { %v632_v47 = vadd.f32 %v625_v22, %v621_v37 }
 0xc2f   :  { %v640_v60 = vmax.f32 %v632_v47, 0.0 }
 0xc31   :  { %v656_v13 = vperm.slane %v640_v60, %v1086_v28 }
 0xc72   :  { %v538_v3 = vpop.xlane.xlu1 %537  ;;  %v624_v4 = vpop.xlane.xlu2 %623 }
 0xc73   :  { %v546_v8 = vadd.f32 %v538_v3, %v925_v21  ;;  %v633_v9 = vadd.f32 %v625_v22, %v624_v4  ;;  %v663_v21 = vsel %vm583_vm9, %v656_v13, %v662_v6  ;;  %v584_v22 = vsel %vm583_vm9, %v571_v18, %v582_v14 }
 0xc75   :  { %v554_v15 = vmax.f32 %v546_v8, 0.0  ;;  %v641_v16 = vmax.f32 %v633_v9, 0.0 }
 0xc77   :  { %v572_v19 = vperm.slane %v554_v15, %v1086_v28  ;;  %v657_v20 = vperm.slane %v641_v16, %v1086_v28 }
 0xc79   :  { %v586_v24 = vsel %vm585_vm10, %v572_v19, %v584_v22  ;;  %v664_v25 = vsel %vm585_vm10, %v657_v20, %v663_v21 }
 0xc7a   :  { %589 = vst.msk [vmem:[%s1129_s10] sm:$0xff] %vm588_vm11, %v586_v24 }
 0xc7b   :  { %666 = vst.msk [vmem:[%s1128_s9] sm:$0xff] %vm588_vm11, %v664_v25 }
 0xc7c   :  { %675 = vsyncpa [#allocation4], 1 }

</bundles_post_ra>
